<compile_context>
chip_gen: v6e
topology: v6e:2x2x1
jax: 0.10.0
libtpu: 0.0.40
codegen_flags: <defaults>
</compile_context>

<pallas_src>
import math

import jax
import jax.numpy as jnp
from jax import lax
from jax.experimental import pallas as pl
from jax.experimental.pallas import tpu as pltpu


_LANES = 128


def _device_config():
    """(tile_rows, num_cores) per TPU generation."""
    try:
        kind = jax.devices()[0].device_kind.lower()
    except Exception:  # pragma: no cover - defensive
        kind = ""
    if "v7" in kind:
        return 8192, 2          # 4 MiB f32 blocks; 2 TensorCores per chip
    if "v6" in kind:
        return 4096, 1          # 2 MiB blocks
    return 2048, 1              # v5e & others: 1 MiB blocks, single core


def _make_rd_kernel(n_recon, recon_rows, n_lik, lik_rows):
    """Fused SSE / sum(log(likelihood)) reduction kernel."""
    recon_elems = recon_rows * _LANES
    lik_elems = lik_rows * _LANES

    def _partial_sum(v, rows):
        # (rows,128) -> (8,128): sublane-aligned reshape, pure VPU adds.
        return v.reshape(rows // 8, 8, _LANES).sum(axis=0)

    def _tail_mask(rows, limit):
        row = lax.broadcasted_iota(jnp.int32, (rows, _LANES), 0)
        lane = lax.broadcasted_iota(jnp.int32, (rows, _LANES), 1)
        return (row * _LANES + lane) < limit

    def kernel(xh_ref, tg_ref, lik_ref, out_ref, sse_acc, log_acc):
        c = pl.program_id(0)
        i = pl.program_id(1)
        tpc = pl.num_programs(1)
        g = c * tpc + i                       # global tile index

        @pl.when(i == 0)
        def _init():
            sse_acc[...] = jnp.zeros_like(sse_acc)
            log_acc[...] = jnp.zeros_like(log_acc)

        # ---- distortion: squared-error accumulation (VPU) -----------------
        rbase = g * recon_elems

        @pl.when(rbase + recon_elems <= n_recon)          # interior fast path
        def _dist_full():
            d = xh_ref[...].astype(jnp.float32) - tg_ref[...].astype(jnp.float32)
            sse_acc[...] += _partial_sum(d * d, recon_rows)

        @pl.when(jnp.logical_and(rbase < n_recon,
                                 rbase + recon_elems > n_recon))
        def _dist_tail():                                  # masked tail tile
            mask = _tail_mask(recon_rows, n_recon - rbase)
            d = xh_ref[...].astype(jnp.float32) - tg_ref[...].astype(jnp.float32)
            sse_acc[...] += _partial_sum(jnp.where(mask, d * d, 0.0), recon_rows)

        # ---- rate: log-likelihood accumulation (EUP + VPU) ----------------
        lbase = g * lik_elems

        @pl.when(lbase + lik_elems <= n_lik)               # interior fast path
        def _rate_full():
            log_acc[...] += _partial_sum(
                jnp.log(lik_ref[...].astype(jnp.float32)), lik_rows)

        @pl.when(jnp.logical_and(lbase < n_lik, lbase + lik_elems > n_lik))
        def _rate_tail():                                  # masked tail tile
            mask = _tail_mask(lik_rows, n_lik - lbase)
            lv = jnp.where(mask, lik_ref[...].astype(jnp.float32), 1.0)
            log_acc[...] += _partial_sum(jnp.log(lv), lik_rows)

        # ---- finalize: single 1-vreg cross-lane reduce per core -----------
        @pl.when(i == tpc - 1)
        def _finalize():
            out_ref[0, 0] = jnp.sum(sse_acc[...])
            out_ref[0, 1] = jnp.sum(log_acc[...])

    return kernel


def _to_slab(x_flat, pad_value):
    """Lane-dense (rows,128) slab, rows padded only to a multiple of 8."""
    n = x_flat.shape[0]
    rows = int(pl.cdiv(n, _LANES))
    rows = int(pl.cdiv(rows, 8)) * 8
    padded = rows * _LANES
    if padded != n:
        x_flat = jnp.pad(x_flat, (0, padded - n), constant_values=pad_value)
    return x_flat.reshape(rows, _LANES)


def _clamped_row_map(num_row_tiles, tiles_per_core):
    def index_map(c, i):
        g = c * tiles_per_core + i
        return (jnp.minimum(g, num_row_tiles - 1), 0)
    return index_map


def rate_distortion_loss(output, target, lmbda=0.01):
    """JAX/Pallas equivalent of RateDistortionLoss(lmbda, 'mse', 'all').forward."""
    x_hat = output['x_hat']
    likelihoods = list(output['likelihoods'].values())

    N, C, H, W = target.shape
    num_pixels = N * H * W
    n_recon = int(N * C * H * W)

    # One combined likelihood slab (fewer inputs, smaller VMEM footprint).
    lik_flat = jnp.concatenate([l.reshape(-1) for l in likelihoods])
    n_lik = int(lik_flat.shape[0])

    tile_rows, num_cores = _device_config()

    xh_slab = _to_slab(x_hat.reshape(-1), 0.0)
    tg_slab = _to_slab(target.reshape(-1), 0.0)
    lik_slab = _to_slab(lik_flat, 1.0)       # log(1) = 0 if pad ever read

    # Per-tensor block rows: never larger than the slab itself.
    recon_rows = min(tile_rows, xh_slab.shape[0])
    lik_rows = min(tile_rows, lik_slab.shape[0])

    recon_tiles = int(pl.cdiv(xh_slab.shape[0], recon_rows))
    lik_tiles = int(pl.cdiv(lik_slab.shape[0], lik_rows))
    total_tiles = max(recon_tiles, lik_tiles)

    num_cores = max(1, min(num_cores, total_tiles))
    tiles_per_core = int(pl.cdiv(total_tiles, num_cores))

    in_specs = [
        pl.BlockSpec((recon_rows, _LANES),
                     _clamped_row_map(recon_tiles, tiles_per_core)),
        pl.BlockSpec((recon_rows, _LANES),
                     _clamped_row_map(recon_tiles, tiles_per_core)),
        pl.BlockSpec((lik_rows, _LANES),
                     _clamped_row_map(lik_tiles, tiles_per_core)),
    ]
    out_specs = pl.BlockSpec((1, 2), lambda c, i: (c, 0),
                             memory_space=pltpu.MemorySpace.SMEM)

    kernel = _make_rd_kernel(n_recon, recon_rows, n_lik, lik_rows)

    # VMEM budget: double-buffered inputs + vreg-sized scratch + margin.
    block_bytes = (2 * recon_rows + lik_rows) * _LANES * 4
    vmem_limit = int(min(2 * block_bytes + (16 << 20), 48 << 20))

    slab_bytes = sum(int(s.size) * s.dtype.itemsize
                     for s in (xh_slab, tg_slab, lik_slab))
    cost = pl.CostEstimate(
        flops=3 * n_recon + 2 * n_lik,
        transcendentals=n_lik,
        bytes_accessed=slab_bytes + num_cores * 2 * 4,
    )

    partials = pl.pallas_call(
        kernel,
        grid=(num_cores, tiles_per_core),
        in_specs=in_specs,
        out_specs=out_specs,
        out_shape=jax.ShapeDtypeStruct((num_cores, 2), jnp.float32),
        scratch_shapes=[pltpu.VMEM((8, _LANES), jnp.float32),
                        pltpu.VMEM((8, _LANES), jnp.float32)],
        compiler_params=pltpu.CompilerParams(
            dimension_semantics=("parallel", "arbitrary"),
            vmem_limit_bytes=vmem_limit),
        cost_estimate=cost,
    )(xh_slab, tg_slab, lik_slab)

    sse = jnp.sum(partials[:, 0])
    log_sum = jnp.sum(partials[:, 1])

    mse = sse / jnp.float32(n_recon)
    bpp = log_sum / jnp.float32(-math.log(2.0) * num_pixels)
    loss = jnp.float32(lmbda * (255.0 ** 2)) * mse + bpp
    psnr = jnp.float32(10.0) * jnp.log10(1.0 / mse)

    return {'loss': loss, 'mse_loss': mse, 'bpp_loss': bpp, 'psnr': psnr}


def _reference(output, target, lmbda=0.01):
    """Pure-JAX reference mirroring the PyTorch forward exactly."""
    N, C, H, W = target.shape
    num_pixels = N * H * W
    bpp = sum(jnp.sum(jnp.log(l)) / (-math.log(2.0) * num_pixels)
              for l in output['likelihoods'].values())
    mse = jnp.mean((output['x_hat'] - target) ** 2)
    loss = lmbda * (255.0 ** 2) * mse + bpp
    psnr = 10.0 * jnp.log10(1.0 / mse)
    return {'loss': loss, 'mse_loss': mse, 'bpp_loss': bpp, 'psnr': psnr}


def _run_case(key, shape, lik_shapes, lmbda=0.01):
    keys = jax.random.split(key, 2 + len(lik_shapes))
    target = jax.random.uniform(keys[0], shape, dtype=jnp.float32)
    x_hat = jnp.clip(
        target + 0.05 * jax.random.normal(keys[1], shape, dtype=jnp.float32),
        0.0, 1.0)
    liks = {
        f'l{i}': jax.random.uniform(keys[2 + i], s, dtype=jnp.float32,
                                    minval=0.05, maxval=1.0)
        for i, s in enumerate(lik_shapes)
    }
    model_output = {'x_hat': x_hat, 'likelihoods': liks}

    out = rate_distortion_loss(model_output, target, lmbda=lmbda)
    out = jax.block_until_ready(out)
    ref = _reference(model_output, target, lmbda=lmbda)
    for k in ('loss', 'mse_loss', 'bpp_loss', 'psnr'):
        assert jnp.allclose(out[k], ref[k], rtol=1e-4, atol=1e-5), (
            k, out[k], ref[k])


if __name__ == "__main__":
    key = jax.random.PRNGKey(0)
    k_small, k_big = jax.random.split(key, 2)

    # Small NCHW case (single partial tile path).
    _run_case(k_small, (2, 3, 16, 16),
              [(2, 8, 4, 4), (2, 8, 2, 2)], lmbda=0.01)

    # Larger case exercising multiple tiles (interior fast path + tail mask).
    _run_case(k_big, (1, 3, 512, 512),
              [(1, 192, 32, 32), (1, 192, 8, 8)], lmbda=0.01)

    print("KERNEL_OK")
</pallas_src>

<mosaic_0001>
module attributes {stable_mosaic.version = 11 : i64} {
  func.func @kernel(%arg0: i32, %arg1: i32, %arg2: memref<16x128xf32, #tpu.memory_space<vmem>>, %arg3: memref<16x128xf32, #tpu.memory_space<vmem>>, %arg4: memref<8x128xf32, #tpu.memory_space<vmem>>, %arg5: memref<1x2xf32, #tpu.memory_space<smem>>, %arg6: memref<8x128xf32, #tpu.memory_space<vmem>>, %arg7: memref<8x128xf32, #tpu.memory_space<vmem>>) attributes {dimension_semantics = [#tpu.dimension_semantics<parallel>, #tpu.dimension_semantics<arbitrary>], iteration_bounds = array<i64: 1, 1>, scalar_prefetch = 0 : i64, scratch_operands = 2 : i64, tpu.core_type = #tpu.core_type<tc>, window_params = [{transform_indices = @transform_0, window_bounds = array<i64: 16, 128>}, {transform_indices = @transform_1, window_bounds = array<i64: 16, 128>}, {transform_indices = @transform_2, window_bounds = array<i64: 8, 128>}, {transform_indices = @transform_3, window_bounds = array<i64: 1, 2>}]} {
    %c1_i32 = arith.constant 1 : i32
    %0 = arith.muli %arg0, %c1_i32 : i32
    %1 = arith.addi %0, %arg1 : i32
    %c0_i32 = arith.constant 0 : i32
    %2 = arith.cmpi eq, %arg1, %c0_i32 : i32
    %3 = arith.extui %2 : i1 to i32
    %c0_i32_0 = arith.constant 0 : i32
    %4 = arith.cmpi ne, %3, %c0_i32_0 : i32
    scf.if %4 {
      %cst = arith.constant 0.000000e+00 : f32
      %30 = vector.broadcast %cst : f32 to vector<8x128xf32>
      %c0 = arith.constant 0 : index
      %c0_15 = arith.constant 0 : index
      %31 = vector.load %arg6[%c0, %c0_15] : memref<8x128xf32, #tpu.memory_space<vmem>>, vector<8x128xf32>
      tpu.vector_store %arg6[%c0, %c0_15], %30 {strides = array<i32>} : memref<8x128xf32, #tpu.memory_space<vmem>>, vector<8x128xf32>,
      %cst_16 = arith.constant 0.000000e+00 : f32
      %32 = vector.broadcast %cst_16 : f32 to vector<8x128xf32>
      %c0_17 = arith.constant 0 : index
      %c0_18 = arith.constant 0 : index
      %33 = vector.load %arg7[%c0_17, %c0_18] : memref<8x128xf32, #tpu.memory_space<vmem>>, vector<8x128xf32>
      tpu.vector_store %arg7[%c0_17, %c0_18], %32 {strides = array<i32>} : memref<8x128xf32, #tpu.memory_space<vmem>>, vector<8x128xf32>,
    } else {
    }
    %c2048_i32 = arith.constant 2048 : i32
    %5 = arith.muli %1, %c2048_i32 : i32
    %c2048_i32_1 = arith.constant 2048 : i32
    %6 = arith.addi %5, %c2048_i32_1 : i32
    %c1536_i32 = arith.constant 1536 : i32
    %7 = arith.cmpi sle, %6, %c1536_i32 : i32
    %8 = arith.extui %7 : i1 to i32
    %c0_i32_2 = arith.constant 0 : i32
    %9 = arith.cmpi ne, %8, %c0_i32_2 : i32
    scf.if %9 {
      %c0 = arith.constant 0 : index
      %c0_15 = arith.constant 0 : index
      %30 = vector.load %arg2[%c0, %c0_15] : memref<16x128xf32, #tpu.memory_space<vmem>>, vector<16x128xf32>
      %c0_16 = arith.constant 0 : index
      %c0_17 = arith.constant 0 : index
      %31 = vector.load %arg3[%c0_16, %c0_17] : memref<16x128xf32, #tpu.memory_space<vmem>>, vector<16x128xf32>
      %32 = arith.subf %30, %31 : vector<16x128xf32>
      %c0_18 = arith.constant 0 : index
      %c0_19 = arith.constant 0 : index
      %33 = vector.load %arg6[%c0_18, %c0_19] : memref<8x128xf32, #tpu.memory_space<vmem>>, vector<8x128xf32>
      %34 = arith.mulf %32, %32 : vector<16x128xf32>
      %35 = vector.shape_cast %34 : vector<16x128xf32> to vector<2x8x128xf32>
      %cst = arith.constant dense<0.000000e+00> : vector<8x128xf32>
      %36 = vector.multi_reduction <add>, %35, %cst [0] : vector<2x8x128xf32> to vector<8x128xf32>
      %37 = arith.addf %33, %36 : vector<8x128xf32>
      %c0_20 = arith.constant 0 : index
      %c0_21 = arith.constant 0 : index
      %38 = vector.load %arg6[%c0_20, %c0_21] : memref<8x128xf32, #tpu.memory_space<vmem>>, vector<8x128xf32>
      tpu.vector_store %arg6[%c0_20, %c0_21], %37 {strides = array<i32>} : memref<8x128xf32, #tpu.memory_space<vmem>>, vector<8x128xf32>,
    } else {
    }
    %c1536_i32_3 = arith.constant 1536 : i32
    %10 = arith.cmpi slt, %5, %c1536_i32_3 : i32
    %c2048_i32_4 = arith.constant 2048 : i32
    %11 = arith.addi %5, %c2048_i32_4 : i32
    %c1536_i32_5 = arith.constant 1536 : i32
    %12 = arith.cmpi sgt, %11, %c1536_i32_5 : i32
    %13 = arith.andi %10, %12 : i1
    %14 = arith.extui %13 : i1 to i32
    %c0_i32_6 = arith.constant 0 : i32
    %15 = arith.cmpi ne, %14, %c0_i32_6 : i32
    scf.if %15 {
      %c1536_i32_15 = arith.constant 1536 : i32
      %30 = arith.subi %c1536_i32_15, %5 : i32
      %31 = tpu.iota {dimensions = array<i32: 0>} : vector<16x128xi32>
      %32 = tpu.iota {dimensions = array<i32: 1>} : vector<16x128xi32>
      %c128_i32 = arith.constant 128 : i32
      %33 = vector.broadcast %c128_i32 : i32 to vector<16x128xi32>
      %34 = arith.muli %31, %33 : vector<16x128xi32>
      %35 = arith.addi %34, %32 : vector<16x128xi32>
      %36 = vector.broadcast %30 : i32 to vector<16x128xi32>
      %37 = arith.cmpi slt, %35, %36 : vector<16x128xi32>
      %c0 = arith.constant 0 : index
      %c0_16 = arith.constant 0 : index
      %38 = vector.load %arg2[%c0, %c0_16] : memref<16x128xf32, #tpu.memory_space<vmem>>, vector<16x128xf32>
      %c0_17 = arith.constant 0 : index
      %c0_18 = arith.constant 0 : index
      %39 = vector.load %arg3[%c0_17, %c0_18] : memref<16x128xf32, #tpu.memory_space<vmem>>, vector<16x128xf32>
      %40 = arith.subf %38, %39 : vector<16x128xf32>
      %c0_19 = arith.constant 0 : index
      %c0_20 = arith.constant 0 : index
      %41 = vector.load %arg6[%c0_19, %c0_20] : memref<8x128xf32, #tpu.memory_space<vmem>>, vector<8x128xf32>
      %42 = arith.mulf %40, %40 : vector<16x128xf32>
      %cst = arith.constant 0.000000e+00 : f32
      %43 = vector.broadcast %cst : f32 to vector<16x128xf32>
      %44 = arith.select %37, %42, %43 : vector<16x128xi1>, vector<16x128xf32>
      %45 = vector.shape_cast %44 : vector<16x128xf32> to vector<2x8x128xf32>
      %cst_21 = arith.constant dense<0.000000e+00> : vector<8x128xf32>
      %46 = vector.multi_reduction <add>, %45, %cst_21 [0] : vector<2x8x128xf32> to vector<8x128xf32>
      %47 = arith.addf %41, %46 : vector<8x128xf32>
      %c0_22 = arith.constant 0 : index
      %c0_23 = arith.constant 0 : index
      %48 = vector.load %arg6[%c0_22, %c0_23] : memref<8x128xf32, #tpu.memory_space<vmem>>, vector<8x128xf32>
      tpu.vector_store %arg6[%c0_22, %c0_23], %47 {strides = array<i32>} : memref<8x128xf32, #tpu.memory_space<vmem>>, vector<8x128xf32>,
    } else {
    }
    %c1024_i32 = arith.constant 1024 : i32
    %16 = arith.muli %1, %c1024_i32 : i32
    %c1024_i32_7 = arith.constant 1024 : i32
    %17 = arith.addi %16, %c1024_i32_7 : i32
    %c320_i32 = arith.constant 320 : i32
    %18 = arith.cmpi sle, %17, %c320_i32 : i32
    %19 = arith.extui %18 : i1 to i32
    %c0_i32_8 = arith.constant 0 : i32
    %20 = arith.cmpi ne, %19, %c0_i32_8 : i32
    scf.if %20 {
      %c0 = arith.constant 0 : index
      %c0_15 = arith.constant 0 : index
      %30 = vector.load %arg7[%c0, %c0_15] : memref<8x128xf32, #tpu.memory_space<vmem>>, vector<8x128xf32>
      %c0_16 = arith.constant 0 : index
      %c0_17 = arith.constant 0 : index
      %31 = vector.load %arg4[%c0_16, %c0_17] : memref<8x128xf32, #tpu.memory_space<vmem>>, vector<8x128xf32>
      %32 = math.log %31 : vector<8x128xf32>
      %33 = vector.shape_cast %32 : vector<8x128xf32> to vector<1x8x128xf32>
      %cst = arith.constant dense<0.000000e+00> : vector<8x128xf32>
      %34 = vector.multi_reduction <add>, %33, %cst [0] : vector<1x8x128xf32> to vector<8x128xf32>
      %35 = arith.addf %30, %34 : vector<8x128xf32>
      %c0_18 = arith.constant 0 : index
      %c0_19 = arith.constant 0 : index
      %36 = vector.load %arg7[%c0_18, %c0_19] : memref<8x128xf32, #tpu.memory_space<vmem>>, vector<8x128xf32>
      tpu.vector_store %arg7[%c0_18, %c0_19], %35 {strides = array<i32>} : memref<8x128xf32, #tpu.memory_space<vmem>>, vector<8x128xf32>,
    } else {
    }
    %c320_i32_9 = arith.constant 320 : i32
    %21 = arith.cmpi slt, %16, %c320_i32_9 : i32
    %c1024_i32_10 = arith.constant 1024 : i32
    %22 = arith.addi %16, %c1024_i32_10 : i32
    %c320_i32_11 = arith.constant 320 : i32
    %23 = arith.cmpi sgt, %22, %c320_i32_11 : i32
    %24 = arith.andi %21, %23 : i1
    %25 = arith.extui %24 : i1 to i32
    %c0_i32_12 = arith.constant 0 : i32
    %26 = arith.cmpi ne, %25, %c0_i32_12 : i32
    scf.if %26 {
      %c320_i32_15 = arith.constant 320 : i32
      %30 = arith.subi %c320_i32_15, %16 : i32
      %31 = tpu.iota {dimensions = array<i32: 0>} : vector<8x128xi32>
      %32 = tpu.iota {dimensions = array<i32: 1>} : vector<8x128xi32>
      %c128_i32 = arith.constant 128 : i32
      %33 = vector.broadcast %c128_i32 : i32 to vector<8x128xi32>
      %34 = arith.muli %31, %33 : vector<8x128xi32>
      %35 = arith.addi %34, %32 : vector<8x128xi32>
      %36 = vector.broadcast %30 : i32 to vector<8x128xi32>
      %37 = arith.cmpi slt, %35, %36 : vector<8x128xi32>
      %c0 = arith.constant 0 : index
      %c0_16 = arith.constant 0 : index
      %38 = vector.load %arg4[%c0, %c0_16] : memref<8x128xf32, #tpu.memory_space<vmem>>, vector<8x128xf32>
      %cst = arith.constant 1.000000e+00 : f32
      %39 = vector.broadcast %cst : f32 to vector<8x128xf32>
      %40 = arith.select %37, %38, %39 : vector<8x128xi1>, vector<8x128xf32>
      %c0_17 = arith.constant 0 : index
      %c0_18 = arith.constant 0 : index
      %41 = vector.load %arg7[%c0_17, %c0_18] : memref<8x128xf32, #tpu.memory_space<vmem>>, vector<8x128xf32>
      %42 = math.log %40 : vector<8x128xf32>
      %43 = vector.shape_cast %42 : vector<8x128xf32> to vector<1x8x128xf32>
      %cst_19 = arith.constant dense<0.000000e+00> : vector<8x128xf32>
      %44 = vector.multi_reduction <add>, %43, %cst_19 [0] : vector<1x8x128xf32> to vector<8x128xf32>
      %45 = arith.addf %41, %44 : vector<8x128xf32>
      %c0_20 = arith.constant 0 : index
      %c0_21 = arith.constant 0 : index
      %46 = vector.load %arg7[%c0_20, %c0_21] : memref<8x128xf32, #tpu.memory_space<vmem>>, vector<8x128xf32>
      tpu.vector_store %arg7[%c0_20, %c0_21], %45 {strides = array<i32>} : memref<8x128xf32, #tpu.memory_space<vmem>>, vector<8x128xf32>,
    } else {
    }
    %c0_i32_13 = arith.constant 0 : i32
    %27 = arith.cmpi eq, %arg1, %c0_i32_13 : i32
    %28 = arith.extui %27 : i1 to i32
    %c0_i32_14 = arith.constant 0 : i32
    %29 = arith.cmpi ne, %28, %c0_i32_14 : i32
    scf.if %29 {
      %c0 = arith.constant 0 : index
      %c0_15 = arith.constant 0 : index
      %30 = vector.load %arg6[%c0, %c0_15] : memref<8x128xf32, #tpu.memory_space<vmem>>, vector<8x128xf32>
      %31 = vector.shape_cast %30 : vector<8x128xf32> to vector<1x8x128xf32>
      %cst = arith.constant dense<0.000000e+00> : vector<1xf32>
      %32 = vector.multi_reduction <add>, %31, %cst [1, 2] : vector<1x8x128xf32> to vector<1xf32>
      %33 = vector.shape_cast %32 : vector<1xf32> to vector<1x1x1xf32>
      %34 = vector.extract %33[0, 0, 0] : f32 from vector<1x1x1xf32>
      %c0_16 = arith.constant 0 : index
      %c0_17 = arith.constant 0 : index
      %35 = memref.load %arg5[%c0_16, %c0_17] : memref<1x2xf32, #tpu.memory_space<smem>>
      memref.store %34, %arg5[%c0_16, %c0_17] : memref<1x2xf32, #tpu.memory_space<smem>>
      %c0_18 = arith.constant 0 : index
      %c0_19 = arith.constant 0 : index
      %36 = vector.load %arg7[%c0_18, %c0_19] : memref<8x128xf32, #tpu.memory_space<vmem>>, vector<8x128xf32>
      %37 = vector.shape_cast %36 : vector<8x128xf32> to vector<1x8x128xf32>
      %cst_20 = arith.constant dense<0.000000e+00> : vector<1xf32>
      %38 = vector.multi_reduction <add>, %37, %cst_20 [1, 2] : vector<1x8x128xf32> to vector<1xf32>
      %39 = vector.shape_cast %38 : vector<1xf32> to vector<1x1x1xf32>
      %40 = vector.extract %39[0, 0, 0] : f32 from vector<1x1x1xf32>
      %c0_21 = arith.constant 0 : index
      %c1 = arith.constant 1 : index
      %41 = memref.load %arg5[%c0_21, %c1] : memref<1x2xf32, #tpu.memory_space<smem>>
      memref.store %40, %arg5[%c0_21, %c1] : memref<1x2xf32, #tpu.memory_space<smem>>
    } else {
    }
    return
  }
  func.func @transform_0(%arg0: i32, %arg1: i32) -> (i32, i32) {
    %c1_i32 = arith.constant 1 : i32
    %0 = arith.muli %arg0, %c1_i32 : i32
    %1 = arith.addi %0, %arg1 : i32
    %c0_i32 = arith.constant 0 : i32
    %2 = arith.minsi %1, %c0_i32 : i32
    %c0_i32_0 = arith.constant 0 : i32
    %c0_i32_1 = arith.constant 0 : i32
    return %2, %c0_i32_0 : i32, i32
  }
  func.func @transform_1(%arg0: i32, %arg1: i32) -> (i32, i32) {
    %c1_i32 = arith.constant 1 : i32
    %0 = arith.muli %arg0, %c1_i32 : i32
    %1 = arith.addi %0, %arg1 : i32
    %c0_i32 = arith.constant 0 : i32
    %2 = arith.minsi %1, %c0_i32 : i32
    %c0_i32_0 = arith.constant 0 : i32
    %c0_i32_1 = arith.constant 0 : i32
    return %2, %c0_i32_0 : i32, i32
  }
  func.func @transform_2(%arg0: i32, %arg1: i32) -> (i32, i32) {
    %c1_i32 = arith.constant 1 : i32
    %0 = arith.muli %arg0, %c1_i32 : i32
    %1 = arith.addi %0, %arg1 : i32
    %c0_i32 = arith.constant 0 : i32
    %2 = arith.minsi %1, %c0_i32 : i32
    %c0_i32_0 = arith.constant 0 : i32
    %c0_i32_1 = arith.constant 0 : i32
    return %2, %c0_i32_0 : i32, i32
  }
  func.func @transform_3(%arg0: i32, %arg1: i32) -> (i32, i32) {
    %c0_i32 = arith.constant 0 : i32
    %c0_i32_0 = arith.constant 0 : i32
    return %arg0, %c0_i32 : i32, i32
  }
}

</mosaic_0001>

<bundles_post_ra>
// kernel: tpu_custom_call.1
= control target key start
LH: loop header
LB: loop body
LE: loop exit
PB: predicated region body
PF: predicated region fallthrough
CT: control target
= control target key end

     0   :  { %8 = vsyncpa [#allocation5], 0  ;;  %s348_s0 = inlined_call_operand.hbm [shape: f32[16,128], index: 0, kind: input, shape index: {}]   ;;  %s349_s1 = inlined_call_operand.hbm [shape: f32[16,128], index: 1, kind: input, shape index: {}]   ;;  %s350_s2 = inlined_call_operand.hbm [shape: f32[8,128], index: 2, kind: input, shape index: {}]   ;;  %s351_s3 = inlined_call_operand.hbm [shape: f32[1,2], index: 3, kind: output, shape index: {}]  }
   0x1   :  { %9 = vsyncpa [#allocation8], 0 }
   0x2   :  { %10 = vsyncpa [#allocation6], 0  ;;  %s310_s12 = smov [#allocation7]   ;;  %s311_s14 = smov [#allocation4]  }
   0x3   :  { %s40_s13 = sshll.u32 %s310_s12, 4  ;;  %s22_s15 = sshll.u32 %s311_s14, 4  ;;  %s41_s13 = int_to_ptr.vmem [resolvable:$true] %s40_s13  ;;  %s23_s15 = int_to_ptr.vmem [resolvable:$true] %s22_s15 }
   0x4   :  { %s244_s16 = scalar_lea.vmem %s41_s13, 256  ;;  %p249_p1 = scmp.lt.s32.totalorder %s41_s13, %s41_s13 }
   0x5   :  { %p245_p0 = scmp.ne.s32.totalorder %s41_s13, %s244_s16  ;;  %p250_p2 = scmp.lt.s32.totalorder %s244_s16, %s244_s16 }
   0x7   :  { %p251_p3 = por %p250_p2, %p249_p1 }
   0x9   :  { %p252_p4 = pnand %p251_p3, %p245_p0 }
   0xb   :  { %255 = shalt.err (!%p252_p4)
}
   0xc   :  { %s312_s17 = smov 128   ;;  %s313_s18 = smov 8  }
   0xd   :  { %46 = dma.hbm_to_vmem [thread:$0]  %s349_s1, 256, %s41_s13, [#allocation8], %s312_s17, %s312_s17, %s313_s18  }
   0xe   :  { %s264_s21 = scalar_lea.vmem %s23_s15, 256  ;;  %p269_p6 = scmp.lt.s32.totalorder %s23_s15, %s23_s15 }
   0xf   :  { %p265_p5 = scmp.ne.s32.totalorder %s23_s15, %s264_s21  ;;  %p270_p7 = scmp.lt.s32.totalorder %s264_s21, %s264_s21 }
  0x11   :  { %p271_p8 = por %p270_p7, %p269_p6 }
  0x13   :  { %p272_p9 = pnand %p271_p8, %p265_p5 }
  0x15   :  { %275 = shalt.err (!%p272_p9)
}
  0x16   :  { %28 = dma.hbm_to_vmem [thread:$0]  %s348_s0, 256, %s23_s15, [#allocation5], %s312_s17, %s312_s17, %s313_s18  }
  0x17   :  { %s314_s24 = smov [#allocation9]  }
  0x18   :  { %s58_s25 = sshll.u32 %s314_s24, 4  ;;  %s59_s25 = int_to_ptr.vmem [resolvable:$true] %s58_s25 }
  0x19   :  { %s284_s26 = scalar_lea.vmem %s59_s25, 128  ;;  %p289_p11 = scmp.lt.s32.totalorder %s59_s25, %s59_s25 }
  0x1a   :  { %p285_p10 = scmp.ne.s32.totalorder %s59_s25, %s284_s26  ;;  %p290_p12 = scmp.lt.s32.totalorder %s284_s26, %s284_s26 }
  0x1c   :  { %p291_p13 = por %p290_p12, %p289_p11 }
  0x1e   :  { %p292_p0 = pnand %p291_p13, %p285_p10 }
  0x20   :  { %295 = shalt.err (!%p292_p0)
}
  0x21   :  { %61 = dma.hbm_to_vmem [thread:$0]  %s350_s2, 128, %s59_s25, [#allocation8]  }
  0x22   :  { %304 = dma.done.wait [#allocation5], 256  }
  0x23   :  { %305 = vsyncadd [#allocation5], 4294967040 }
  0x24   :  { %306 = dma.done.wait [#allocation8], 384  }
  0x25   :  { %307 = vsyncadd [#allocation8], 4294966912  ;;  %v114_v0 = vlaneseq  ;;  %v126_v7 = vld [vmem:[#allocation4] sm:$0xff]  ;;  %v127_v8 = vld [vmem:[#allocation4 + $0x8] sm:$0xff]  ;;  %s315_s28 = smov [#allocation10]  }
  0x26   :  { %v128_v9 = vld [vmem:[#allocation7] sm:$0xff]  ;;  %v129_v11 = vld [vmem:[#allocation7 + $0x8] sm:$0xff]  ;;  %v168_v13 = vld [vmem:[#allocation9] sm:$0xff] }
  0x27   :  { %v115_v1 = vshrl.u32 %v114_v0, 7  ;;  %v118_v2 = vand.u32 127, %v114_v0  ;;  %v130_v12 = vsub.f32 %v126_v7, %v128_v9  ;;  %v131_v14 = vsub.f32 %v127_v8, %v129_v11 }
  0x29   :  { %v116_v3 = vadd.s32 8, %v115_v1  ;;  %v119_v4 = vmul.u32 128, %v115_v1  ;;  %v133_v16 = vmul.f32 %v130_v12, %v130_v12  ;;  %v134_v17 = vmul.f32 %v131_v14, %v131_v14 }
  0x2b   :  { %v120_v5 = vmul.u32 128, %v116_v3  ;;  %v121_v6 = vadd.s32 %v119_v4, %v118_v2 }
  0x2d   :  { %v122_v10 = vadd.s32 %v120_v5, %v118_v2  ;;  %vm167_vm0 = vcmp.lt.s32.totalorder %v121_v6, 320  ;;  %vm124_vm1 = vcmp.lt.s32.totalorder %v121_v6, 1536 }
  0x2e   :  { %v169_v15 = vsel %vm167_vm0, %v168_v13, 1.0  ;;  %v135_v18 = vsel %vm124_vm1, %v133_v16, 0.0 }
  0x2f   :  { %vm125_vm2 = vcmp.lt.s32.totalorder %v122_v10, 1536  ;;  %234 = vlog2.f32 %v169_v15 }
  0x30   :  { %v136_v19 = vsel %vm125_vm2, %v134_v17, 0.0 }
  0x31   :  { %v137_v20 = vadd.f32 %v136_v19, %v135_v18 }
  0x33   :  { %180 = vadd.xlane.f32.xlu0 %v137_v20 }
  0x3c   :  { %v235_v21 = vpop.eup %234 }
  0x3d   :  { %v172_v22 = vmul.f32 0.6931472, %v235_v21 }
  0x3f   :  { %192 = vadd.xlane.f32.xlu0 %v172_v22 }
  0xbc   :  { %v181_v23 = vpop.xlane.xlu0 %180 }
  0xbd   :  { %v182_v24 = vrot.slane %v181_v23, 4 }
  0xbf   :  { %v183_v25 = vadd.f32 %v182_v24, %v181_v23 }
  0xc1   :  { %v184_v26 = vrot.slane %v183_v25, 2 }
  0xc3   :  { %v185_v27 = vadd.f32 %v184_v26, %v183_v25 }
  0xc5   :  { %v186_v28 = vrot.slane %v185_v27, 1 }
  0xc7   :  { %v187_v31 = vadd.f32 %v186_v28, %v185_v27 }
  0xc8   :  { %v193_v29 = vpop.xlane.xlu0 %192 }
  0xc9   :  { %v194_v30 = vrot.slane %v193_v29, 4  ;;  %224 = vpush %v187_v31 }
  0xcb   :  { %v195_v32 = vadd.f32 %v194_v30, %v193_v29 }
  0xcd   :  { %v196_v33 = vrot.slane %v195_v32, 2 }
  0xcf   :  { %v197_v34 = vadd.f32 %v196_v33, %v195_v32 }
  0xd1   :  { %v198_v35 = vrot.slane %v197_v34, 1 }
  0xd3   :  { %v199_v36 = vadd.f32 %v198_v35, %v197_v34 }
  0xd5   :  { %226 = vpush %v199_v36 }
  0xfa   :  { %s225_s0 = spop %224 }
  0xfb   :  { %190 = sst [smem:[#allocation10]] %s225_s0 }
 0x106   :  { %s227_s2 = spop %226 }
 0x107   :  { %202 = sst [smem:[#allocation10 + $0x1]] %s227_s2 }
 0x108   :  { %210 = dma.smem_to_hbm %s315_s28, 16, %s351_s3, [#allocation6]  }
 0x109   :  { %308 = dma.done.wait [#allocation6], 16  }
 0x10a   :  { %309 = vsyncadd [#allocation6], 4294967280 }
 0x10b   :  { %214 = sfence }
 0x10c   :  { %215 = vsyncpa [#allocation5], 1 }
 0x10d   :  { %216 = vsyncpa [#allocation8], 1 }
 0x10e   :  { %217 = vsyncpa [#allocation6], 1 }

</bundles_post_ra>
